<compile_context>
chip_gen: v7x
topology: tpu7x:2x2x1
jax: 0.10.0
libtpu: 0.0.40
codegen_flags: <defaults>
</compile_context>

<pallas_src>
import functools

import jax
import jax.numpy as jnp
from jax.experimental import pallas as pl
from jax.experimental.pallas import tpu as pltpu

LANES = 128      # vreg lane width
SUBLANES = 8     # f32 sublane count


def lr_kernel(w_ref, b_ref, x_ref, o_ref):
    # w_ref: (1, 2) f32 in SMEM; b_ref: (1,) f32 in SMEM
    # x_ref: (2, tile_rows, 128) f32 feature-major batch slab in VMEM
    # o_ref: (tile_rows, 128) f32 lane-dense output slab in VMEM
    w0 = w_ref[0, 0]
    w1 = w_ref[0, 1]
    b = b_ref[0]
    # Affine transform as a 2-term scalar*vector FMA on the VPU.
    z = x_ref[0] * w0 + x_ref[1] * w1 + b
    # sigmoid(z) = 1 / (1 + exp(-z)); exp on the EUP, exact divide (free here).
    o_ref[...] = 1.0 / (1.0 + jnp.exp(-z))


def _round_up(n, m):
    return ((n + m - 1) // m) * m


@functools.partial(jax.jit, static_argnames=("tile_rows",))
def lr_forward(x, weight, bias, *, tile_rows=1024):
    """x: (B, 2) f32; weight: (1, 2) f32; bias: (1,) f32 -> (B, 1) f32."""
    B = x.shape[0]

    # Lane-dense repack: batch -> (rows, 128).  rows is sublane-aligned only;
    # the last grid block may be partial (Pallas pads reads / masks writes),
    # and padded/garbage rows are sliced off by [:B] at the end.
    rows = _round_up(pl.cdiv(B, LANES), SUBLANES)
    b_pad = rows * LANES

    # Tile choice: as large as allowed, but guarantee >=2 grid blocks when the
    # batch can be split so the "parallel" axis shards across v7x's two TCs.
    tr = min(tile_rows, rows)
    if rows > SUBLANES:
        tr = min(tr, _round_up(pl.cdiv(rows, 2), SUBLANES))
    grid = pl.cdiv(rows, tr)

    # Single fused pad+transpose pass -> feature-major (2, rows, 128) slab.
    x_pad = jnp.pad(x.astype(jnp.float32), ((0, b_pad - B), (0, 0)))
    xf = x_pad.T.reshape(2, rows, LANES)

    out = pl.pallas_call(
        lr_kernel,
        out_shape=jax.ShapeDtypeStruct((rows, LANES), jnp.float32),
        grid=(grid,),
        in_specs=[
            pl.BlockSpec(memory_space=pltpu.MemorySpace.SMEM),    # weight (1, 2)
            pl.BlockSpec(memory_space=pltpu.MemorySpace.SMEM),    # bias   (1,)
            pl.BlockSpec((2, tr, LANES), lambda i: (0, i, 0)),     # x slab
        ],
        out_specs=pl.BlockSpec((tr, LANES), lambda i: (i, 0)),
        compiler_params=pltpu.CompilerParams(
            dimension_semantics=("parallel",)),
        cost_estimate=pl.CostEstimate(
            flops=5 * b_pad,            # 2 mul + 2 add + 1 div per element
            transcendentals=b_pad,      # exp per element
            bytes_accessed=12 * b_pad,  # 2 x f32 in + 1 x f32 out
        ),
    )(weight.astype(jnp.float32), bias.astype(jnp.float32), xf)

    return out.reshape(b_pad, 1)[:B]


if __name__ == "__main__":
    key = jax.random.PRNGKey(0)
    kx, kw, kb = jax.random.split(key, 3)

    # Deterministic param init mimicking nn.Linear's U(-1/sqrt(fan_in), ...)
    bound = 1.0 / jnp.sqrt(2.0)
    weight = jax.random.uniform(kw, (1, 2), dtype=jnp.float32,
                                minval=-bound, maxval=bound)
    bias = jax.random.uniform(kb, (1,), dtype=jnp.float32,
                              minval=-bound, maxval=bound)

    # Small batch consistent with the module (Linear(2, 1)).
    B = 8
    x = jax.random.normal(kx, (B, 2), dtype=jnp.float32)

    out = jax.block_until_ready(lr_forward(x, weight, bias))
    ref = jax.nn.sigmoid(x @ weight.T + bias)
    assert out.shape == (B, 1)
    assert jnp.allclose(out, ref, atol=2e-3, rtol=2e-3), "mismatch vs reference"

    # Larger, non-aligned batch to exercise partial-last-block + multi-block grid.
    B2 = 70000
    x2 = jax.random.normal(kx, (B2, 2), dtype=jnp.float32)
    out2 = jax.block_until_ready(lr_forward(x2, weight, bias))
    ref2 = jax.nn.sigmoid(x2 @ weight.T + bias)
    assert out2.shape == (B2, 1)
    assert jnp.allclose(out2, ref2, atol=2e-3, rtol=2e-3), "mismatch vs reference (large batch)"

    print("KERNEL_OK")
</pallas_src>

<mosaic_0001>
module attributes {stable_mosaic.version = 11 : i64} {
  func.func @lr_kernel(%arg0: i32, %arg1: memref<1x2xf32, #tpu.memory_space<smem>>, %arg2: memref<1xf32, #tpu.memory_space<smem>>, %arg3: memref<2x8x128xf32, #tpu.memory_space<vmem>>, %arg4: memref<8x128xf32, #tpu.memory_space<vmem>>) attributes {dimension_semantics = [#tpu.dimension_semantics<parallel>], iteration_bounds = array<i64: 1>, scalar_prefetch = 0 : i64, scratch_operands = 0 : i64, tpu.core_type = #tpu.core_type<tc>, window_params = [{transform_indices = @transform_0, window_bounds = array<i64: 1, 2>}, {transform_indices = @transform_1, window_bounds = array<i64: 1>}, {transform_indices = @transform_2, window_bounds = array<i64: 2, 8, 128>}, {transform_indices = @transform_3, window_bounds = array<i64: 8, 128>}]} {
    %c0 = arith.constant 0 : index
    %c0_0 = arith.constant 0 : index
    %0 = memref.load %arg1[%c0, %c0_0] : memref<1x2xf32, #tpu.memory_space<smem>>
    %c0_1 = arith.constant 0 : index
    %c1 = arith.constant 1 : index
    %1 = memref.load %arg1[%c0_1, %c1] : memref<1x2xf32, #tpu.memory_space<smem>>
    %c0_2 = arith.constant 0 : index
    %2 = memref.load %arg2[%c0_2] : memref<1xf32, #tpu.memory_space<smem>>
    %c0_3 = arith.constant 0 : index
    %c0_4 = arith.constant 0 : index
    %c0_5 = arith.constant 0 : index
    %3 = vector.load %arg3[%c0_3, %c0_4, %c0_5] : memref<2x8x128xf32, #tpu.memory_space<vmem>>, vector<1x8x128xf32>
    %4 = vector.shape_cast %3 : vector<1x8x128xf32> to vector<8x128xf32>
    %5 = vector.broadcast %0 : f32 to vector<8x128xf32>
    %6 = arith.mulf %4, %5 : vector<8x128xf32>
    %c1_6 = arith.constant 1 : index
    %c0_7 = arith.constant 0 : index
    %c0_8 = arith.constant 0 : index
    %7 = vector.load %arg3[%c1_6, %c0_7, %c0_8] : memref<2x8x128xf32, #tpu.memory_space<vmem>>, vector<1x8x128xf32>
    %8 = vector.shape_cast %7 : vector<1x8x128xf32> to vector<8x128xf32>
    %9 = vector.broadcast %1 : f32 to vector<8x128xf32>
    %10 = arith.mulf %8, %9 : vector<8x128xf32>
    %11 = arith.addf %6, %10 : vector<8x128xf32>
    %12 = vector.broadcast %2 : f32 to vector<8x128xf32>
    %13 = arith.addf %11, %12 : vector<8x128xf32>
    %cst = arith.constant 0.000000e+00 : f32
    %14 = vector.broadcast %cst : f32 to vector<8x128xf32>
    %15 = arith.subf %14, %13 : vector<8x128xf32>
    %16 = math.exp %15 : vector<8x128xf32>
    %cst_9 = arith.constant 1.000000e+00 : f32
    %17 = vector.broadcast %cst_9 : f32 to vector<8x128xf32>
    %18 = arith.addf %17, %16 : vector<8x128xf32>
    %cst_10 = arith.constant 1.000000e+00 : f32
    %19 = vector.broadcast %cst_10 : f32 to vector<8x128xf32>
    %20 = arith.divf %19, %18 : vector<8x128xf32>
    %c0_11 = arith.constant 0 : index
    %c0_12 = arith.constant 0 : index
    %21 = vector.load %arg4[%c0_11, %c0_12] : memref<8x128xf32, #tpu.memory_space<vmem>>, vector<8x128xf32>
    tpu.vector_store %arg4[%c0_11, %c0_12], %20 {strides = array<i32>} : memref<8x128xf32, #tpu.memory_space<vmem>>, vector<8x128xf32>,
    return
  }
  func.func @transform_0(%arg0: i32) -> (i32, i32) {
    %c0_i32 = arith.constant 0 : i32
    %c0_i32_0 = arith.constant 0 : i32
    %c0_i32_1 = arith.constant 0 : i32
    return %c0_i32, %c0_i32_0 : i32, i32
  }
  func.func @transform_1(%arg0: i32) -> i32 {
    %c0_i32 = arith.constant 0 : i32
    %c0_i32_0 = arith.constant 0 : i32
    return %c0_i32 : i32
  }
  func.func @transform_2(%arg0: i32) -> (i32, i32, i32) {
    %c0_i32 = arith.constant 0 : i32
    %c0_i32_0 = arith.constant 0 : i32
    %c0_i32_1 = arith.constant 0 : i32
    return %c0_i32, %arg0, %c0_i32_0 : i32, i32, i32
  }
  func.func @transform_3(%arg0: i32) -> (i32, i32) {
    %c0_i32 = arith.constant 0 : i32
    %c0_i32_0 = arith.constant 0 : i32
    return %arg0, %c0_i32 : i32, i32
  }
}

</mosaic_0001>

<bundles_post_ra>
// kernel: lr_forward.1
= control target key start
LH: loop header
LB: loop body
LE: loop exit
PB: predicated region body
PF: predicated region fallthrough
CT: control target
= control target key end

     0   :  { %9 = vsyncpa [#allocation4], 0  ;;  %s110_s0 = inlined_call_operand.vmem [shape: f32[1,2], index: 0, kind: input, shape index: {}]   ;;  %s111_s1 = inlined_call_operand.<no memory space> [shape: f32[1], index: 1, kind: input, shape index: {}]   ;;  %s112_s2 = inlined_call_operand.vmem [shape: f32[2,8,128], index: 2, kind: input, shape index: {}]   ;;  %s113_s3 = inlined_call_operand.vmem [shape: f32[8,128], index: 3, kind: output, shape index: {}]  }
   0x1   :  { %s16_s14 = sshll.u32 %s110_s0, 4  ;;  %s17_s14 = int_to_ptr.vmem [resolvable:$true] %s16_s14 }
   0x2   :  { %s60_s15 = scalar_lea.vmem %s17_s14, 16  ;;  %p65_p1 = scmp.lt.s32.totalorder %s17_s14, %s17_s14 }
   0x3   :  { %p61_p0 = scmp.ne.s32.totalorder %s17_s14, %s60_s15  ;;  %p66_p2 = scmp.lt.s32.totalorder %s60_s15, %s60_s15 }
   0x5   :  { %p67_p3 = por %p66_p2, %p65_p1 }
   0x7   :  { %p68_p4 = pnand %p67_p3, %p61_p0 }
   0x9   :  { %71 = shalt.err (!%p68_p4)
}
   0xa   :  { %s74_s16 = smov [#allocation3]  }
   0xb   :  { %19 = dma.vmem_to_smem %s17_s14, 16, %s74_s16, [#allocation4]  }
   0xc   :  { %72 = dma.done.wait [#allocation4], 16  }
   0xd   :  { %73 = vsyncadd [#allocation4], 4294967280 }
   0xe   :  { %27 = sfence }
   0xf   :  { %s28_s17 = sld [smem:[#allocation3]]  ;;  %s53_s18 = sld [smem:[#allocation3 + $0x1]]  ;;  %v31_v0 = vld [vmem:[%s112_s2] sm:$0xff]  ;;  %v54_v1 = vld [vmem:[%s112_s2 + $0x8] sm:$0xff]  ;;  %v39_v6 = vstv %s111_s1 }
  0x15   :  { %v32_v2 = vstv %s28_s17  ;;  %v36_v3 = vstv %s53_s18 }
  0x16   :  { %v33_v4 = vmul.f32 %v32_v2, %v31_v0  ;;  %v37_v5 = vmul.f32 %v54_v1, %v36_v3 }
  0x18   :  { %v38_v7 = vadd.f32 %v37_v5, %v33_v4 }
  0x1a   :  { %v40_v8 = vadd.f32 %v39_v6, %v38_v7 }
  0x1c   :  { %v41_v9 = vsub.f32 0.0, %v40_v8 }
  0x1e   :  { %v42_v10 = vmul.f32 1.442695, %v41_v9 }
  0x20   :  { %56 = vpow2.f32 %v42_v10 }
  0x2a   :  { %v57_v11 = vpop.eup %56 }
  0x2b   :  { %v44_v12 = vadd.f32 1.0, %v57_v11 }
  0x2d   :  { %58 = vrcp.f32 %v44_v12 }
  0x37   :  { %v59_v13 = vpop.eup %58 }
  0x38   :  { %47 = vst [vmem:[%s113_s3] sm:$0xff] %v59_v13 }
  0x39   :  { %52 = vsyncpa [#allocation4], 1 }

</bundles_post_ra>
